<compile_context>
chip_gen: v7x
topology: tpu7x:2x2x1
jax: 0.10.0
libtpu: 0.0.40
codegen_flags: <defaults>
</compile_context>

<pallas_src>
from functools import partial

import numpy as np
import jax
import jax.numpy as jnp
from jax.experimental import pallas as pl
from jax.experimental.pallas import tpu as pltpu


def _round_up(x, m):
    return ((x + m - 1) // m) * m


def _disc_kernel(emb_ref,    # (L_pad, TILE_N, D)   bf16, time-major embedded tile
                 w_ref,      # (Kmax*D, CO_PAD)     bf16, fused conv weights
                 b_ref,      # (1, CO_PAD)          f32,  fused conv bias
                 mask_ref,   # (T_pad, CO_PAD)      f32,  time-validity mask
                 fcw_ref,    # (CO_PAD, C_PAD)      bf16/f32, fc1 weight (zero-padded)
                 fcb_ref,    # (1, C_PAD)           f32,  fc1 bias
                 out_ref,    # (TILE_N, C_PAD)      f32,  logits (lane-dense)
                 *, kmax, d, t_blk, n_chunks, fuse_windows):
    tile_n = out_ref.shape[0]
    co_pad = w_ref.shape[1]

    pooled = None
    # Static loop over time chunks: conv matmul(s) -> bias+ReLU -> mask once
    # -> axis-0 max -> fold into running max accumulator.
    # TODO(synk): for very long sequences switch to lax.fori_loop + pl.ds chunk
    #             slicing to bound code size / vreg live ranges.
    for ci in range(n_chunks):
        t0 = ci * t_blk
        if fuse_windows:
            # Deep-K fused im2col matmul (v5e, or D lane-aligned): pure
            # lane-block concat, deep MXU contraction.
            win = jnp.concatenate(
                [emb_ref[t0 + k:t0 + k + t_blk] for k in range(kmax)], axis=-1)
            acc = jnp.dot(win.reshape(t_blk * tile_n, kmax * d), w_ref[...],
                          preferred_element_type=jnp.float32)
        else:
            # Kmax accumulating matmuls: no windows temp, no lane relayout
            # (preferred on v6e / v7x when D % 128 != 0).
            acc = jnp.dot(
                emb_ref[t0:t0 + t_blk].reshape(t_blk * tile_n, d),
                w_ref[0:d, :], preferred_element_type=jnp.float32)
            for k in range(1, kmax):
                xk = emb_ref[t0 + k:t0 + k + t_blk].reshape(t_blk * tile_n, d)
                acc = acc + jnp.dot(xk, w_ref[k * d:(k + 1) * d, :],
                                    preferred_element_type=jnp.float32)

        h = jnp.maximum(acc + b_ref[...], 0.0)                 # bias + ReLU (f32)
        # Masked max over this time chunk.  Invalid (t, branch) positions are
        # forced to 0, which is exact because every valid value is >= 0.
        h = (h.reshape(t_blk, tile_n, co_pad)
             * mask_ref[t0:t0 + t_blk][:, None, :])
        cmax = jnp.max(h, axis=0)                              # (TILE_N, CO_PAD)
        pooled = cmax if pooled is None else jnp.maximum(pooled, cmax)

    # Fused fc1 (branch concat implicit in the channel layout); f32 MXU acc.
    logits = jnp.dot(pooled.astype(fcw_ref.dtype), fcw_ref[...],
                     preferred_element_type=jnp.float32)
    out_ref[...] = logits + fcb_ref[...]


def discriminator_forward(tokens, params, *, ks, co, block_n=256, time_block=16):
    """tokens: (N, L) int32. Returns logits (N, C) float32 (eval semantics)."""
    ks = tuple(int(k) for k in ks)
    kmax, kmin = max(ks), min(ks)
    n, l = tokens.shape
    d = params['embed'].shape[1]
    c = params['fc_b'].shape[-1]
    co3 = len(ks) * co
    co_pad = _round_up(co3, 128)            # lane-dense fused channel dim
    c_pad = _round_up(c, 128)               # lane-dense output dim

    # ---- generation-aware knobs ---------------------------------------------
    try:
        dk = jax.devices()[0].device_kind.lower()
    except Exception:
        dk = ""
    is_v5e = ('v5e' in dk) or ('v5 lite' in dk) or ('v5lite' in dk)
    try:
        vmem_cap = int(pltpu.get_tpu_info().vmem_capacity_bytes)
    except Exception:
        vmem_cap = 64 * 1024 * 1024
    # ~38 MiB on 64 MiB/TC parts (v7x), ~77 MiB on 128 MiB parts (v5e/v6e).
    vmem_limit = int(min(96 * 1024 * 1024,
                         max(32 * 1024 * 1024, (vmem_cap * 3) // 5)))

    # ---- time blocking -------------------------------------------------------
    t_total = l - kmin + 1                   # longest conv output length
    t_blk = max(1, min(int(time_block), t_total))
    n_chunks = (t_total + t_blk - 1) // t_blk
    t_pad = n_chunks * t_blk
    l_pad = t_pad + kmax - 1                 # rows needed for every shifted slice

    # ---- batch tiling: multiples of 16 (bf16 sublane tile); try to give
    #      >= 2 grid tiles so both v7x TensorCores get work. -------------------
    if n >= 32:
        tile_n = min(block_n, _round_up((n + 1) // 2, 16))
    else:
        tile_n = _round_up(max(n, 1), 16)
    n_pad = _round_up(n, tile_n)

    # ---- embedding lookup directly in time-major layout ----------------------
    # Pad the tiny int32 token matrix (pad id 0 is fine: padded time rows only
    # feed masked positions or zero weight rows) and gather with tokens.T so
    # the gather itself yields (L_pad, N_pad, D) -- no pad/transpose HBM passes
    # over the big embedded tensor.
    tokens_p = jnp.pad(tokens, ((0, n_pad - n), (0, l_pad - l)))
    emb_t = jnp.take(params['embed'].astype(jnp.bfloat16), tokens_p.T, axis=0)

    # ---- fuse + pad weights once (tiny, wrapper-side) ------------------------
    w_cols, b_cols = [], []
    for i, k in enumerate(ks):
        wi = params['conv_w'][i].reshape(k * d, co)             # (K*D, Co)
        w_cols.append(jnp.pad(wi, ((0, (kmax - k) * d), (0, 0))))
        b_cols.append(params['conv_b'][i].reshape(1, co))
    w_fused = jnp.concatenate(w_cols, axis=1)                   # (Kmax*D, 3*Co)
    w_fused = jnp.pad(w_fused, ((0, 0), (0, co_pad - co3))).astype(jnp.bfloat16)
    b_fused = jnp.pad(jnp.concatenate(b_cols, axis=1),
                      ((0, 0), (0, co_pad - co3))).astype(jnp.float32)

    # validity mask over (time position, fused channel)
    t_lim = np.repeat(np.array([l - k + 1 for k in ks], np.int32), co)
    mask_np = (np.arange(t_pad)[:, None] < t_lim[None, :]).astype(np.float32)
    mask = jnp.asarray(np.pad(mask_np, ((0, 0), (0, co_pad - co3))))

    # fc1: bf16 on v6e/v7x (halves VMEM, single MXU pass), f32 on v5e.
    fc_dtype = jnp.float32 if is_v5e else jnp.bfloat16
    fcw = jnp.pad(params['fc_w'],
                  ((0, co_pad - co3), (0, c_pad - c))).astype(fc_dtype)
    fcb = jnp.pad(params['fc_b'].reshape(1, c),
                  ((0, 0), (0, c_pad - c))).astype(jnp.float32)

    # Deep-K fused im2col only when lane-aligned, or on v5e where MXU depth
    # matters more than the lane relayout; else accumulating matmuls.
    fuse_windows = (d % 128 == 0) or is_v5e

    kernel = partial(_disc_kernel, kmax=kmax, d=d, t_blk=t_blk,
                     n_chunks=n_chunks, fuse_windows=fuse_windows)
    out = pl.pallas_call(
        kernel,
        out_shape=jax.ShapeDtypeStruct((n_pad, c_pad), jnp.float32),
        grid=(n_pad // tile_n,),
        in_specs=[
            pl.BlockSpec((l_pad, tile_n, d), lambda i: (0, i, 0)),   # emb tile
            pl.BlockSpec(w_fused.shape, lambda i: (0, 0)),           # constants:
            pl.BlockSpec(b_fused.shape, lambda i: (0, 0)),           #  same block
            pl.BlockSpec(mask.shape, lambda i: (0, 0)),              #  every step
            pl.BlockSpec(fcw.shape, lambda i: (0, 0)),
            pl.BlockSpec(fcb.shape, lambda i: (0, 0)),
        ],
        out_specs=pl.BlockSpec((tile_n, c_pad), lambda i: (i, 0)),
        compiler_params=pltpu.CompilerParams(
            dimension_semantics=("parallel",),
            vmem_limit_bytes=vmem_limit),
    )(emb_t, w_fused, b_fused, mask, fcw, fcb)
    return out[:n, :c]


def reference_forward(tokens, params, *, ks, co):
    """Pure-JAX f32 reference matching the PyTorch module (eval path)."""
    emb = jnp.take(params['embed'], tokens, axis=0).astype(jnp.float32)
    n, l, _ = emb.shape
    feats = []
    for i, k in enumerate(ks):
        t = l - k + 1
        w = params['conv_w'][i]                                 # (K, D, Co)
        acc = jnp.zeros((n, t, co), jnp.float32)
        for kk in range(k):
            acc = acc + jnp.einsum('ntd,dc->ntc', emb[:, kk:kk + t, :], w[kk])
        h = jax.nn.relu(acc + params['conv_b'][i])
        feats.append(jnp.max(h, axis=1))
    x = jnp.concatenate(feats, axis=1)
    return x @ params['fc_w'] + params['fc_b']


def init_params(key, *, embed_num, embed_dim, class_num, kernel_num, kernel_sizes):
    V, D, C, Co, Ks = embed_num, embed_dim, class_num, kernel_num, kernel_sizes
    keys = jax.random.split(key, 3 + 2 * len(Ks))
    params = {
        'embed': jax.random.normal(keys[0], (V, D), jnp.float32),
        'conv_w': [],
        'conv_b': [],
    }
    for i, K in enumerate(Ks):
        bound = 1.0 / float(np.sqrt(K * D))
        params['conv_w'].append(jax.random.uniform(
            keys[1 + 2 * i], (K, D, Co), jnp.float32, -bound, bound))
        params['conv_b'].append(jax.random.uniform(
            keys[2 + 2 * i], (1, Co), jnp.float32, -bound, bound))
    fan_in = len(Ks) * Co
    bound = 1.0 / float(np.sqrt(fan_in))
    params['fc_w'] = jax.random.uniform(
        keys[-2], (fan_in, C), jnp.float32, -bound, bound)
    params['fc_b'] = jax.random.uniform(
        keys[-1], (1, C), jnp.float32, -bound, bound)
    return params


if __name__ == "__main__":
    # Small shapes consistent with the module:
    #   vocab V=50, embed_dim D=32, classes C=2, kernel_num Co=4,
    #   kernel_sizes Ks=(3,4,5), batch N=2, seq_len L=8.
    V, D, C, Co = 50, 32, 2, 4
    Ks = (3, 4, 5)
    N, L = 2, 8

    key = jax.random.PRNGKey(0)
    pkey, tkey = jax.random.split(key)
    params = init_params(pkey, embed_num=V, embed_dim=D, class_num=C,
                         kernel_num=Co, kernel_sizes=Ks)
    tokens = jax.random.randint(tkey, (N, L), 0, V, dtype=jnp.int32)

    fwd = jax.jit(partial(discriminator_forward, ks=Ks, co=Co))
    logits = fwd(tokens, params)
    jax.block_until_ready(logits)
    assert logits.shape == (N, C) and logits.dtype == jnp.float32

    ref = reference_forward(tokens, params, ks=Ks, co=Co)
    np.testing.assert_allclose(np.asarray(logits), np.asarray(ref),
                               rtol=1e-1, atol=5e-2)
    print("KERNEL_OK")
</pallas_src>

<mosaic_0001>
module attributes {stable_mosaic.version = 11 : i64} {
  func.func @_disc_kernel(%arg0: i32, %arg1: memref<10x16x32xbf16, #tpu.memory_space<vmem>>, %arg2: memref<160x128xbf16, #tpu.memory_space<vmem>>, %arg3: memref<1x128xf32, #tpu.memory_space<vmem>>, %arg4: memref<6x128xf32, #tpu.memory_space<vmem>>, %arg5: memref<128x128xbf16, #tpu.memory_space<vmem>>, %arg6: memref<1x128xf32, #tpu.memory_space<vmem>>, %arg7: memref<16x128xf32, #tpu.memory_space<vmem>>) attributes {dimension_semantics = [#tpu.dimension_semantics<parallel>], iteration_bounds = array<i64: 1>, scalar_prefetch = 0 : i64, scratch_operands = 0 : i64, tpu.core_type = #tpu.core_type<tc>, window_params = [{transform_indices = @transform_0, window_bounds = array<i64: 10, 16, 32>}, {pipeline_mode = #tpu.pipeline_mode<synchronous>, transform_indices = @transform_1, window_bounds = array<i64: 160, 128>}, {pipeline_mode = #tpu.pipeline_mode<synchronous>, transform_indices = @transform_2, window_bounds = array<i64: 1, 128>}, {pipeline_mode = #tpu.pipeline_mode<synchronous>, transform_indices = @transform_3, window_bounds = array<i64: 6, 128>}, {pipeline_mode = #tpu.pipeline_mode<synchronous>, transform_indices = @transform_4, window_bounds = array<i64: 128, 128>}, {pipeline_mode = #tpu.pipeline_mode<synchronous>, transform_indices = @transform_5, window_bounds = array<i64: 1, 128>}, {transform_indices = @transform_6, window_bounds = array<i64: 16, 128>}]} {
    %c0 = arith.constant 0 : index
    %c0_0 = arith.constant 0 : index
    %c0_1 = arith.constant 0 : index
    %0 = vector.load %arg1[%c0, %c0_0, %c0_1] : memref<10x16x32xbf16, #tpu.memory_space<vmem>>, vector<6x16x32xbf16>
    %1 = vector.shape_cast %0 : vector<6x16x32xbf16> to vector<96x32xbf16>
    %c0_2 = arith.constant 0 : index
    %c0_3 = arith.constant 0 : index
    %2 = vector.load %arg2[%c0_2, %c0_3] : memref<160x128xbf16, #tpu.memory_space<vmem>>, vector<32x128xbf16>
    %cst = arith.constant dense<0.000000e+00> : vector<96x128xf32>
    %3 = tpu.matmul %1, %2, %cst {dimension_numbers = #tpu.dot_dimension_numbers<[1], [0], [0], [1], [0, 0, 1, 1], [], []>} : vector<96x32xbf16>, vector<32x128xbf16>, vector<96x128xf32> -> vector<96x128xf32>
    %c1 = arith.constant 1 : index
    %c0_4 = arith.constant 0 : index
    %c0_5 = arith.constant 0 : index
    %4 = vector.load %arg1[%c1, %c0_4, %c0_5] : memref<10x16x32xbf16, #tpu.memory_space<vmem>>, vector<6x16x32xbf16>
    %5 = vector.shape_cast %4 : vector<6x16x32xbf16> to vector<96x32xbf16>
    %c32 = arith.constant 32 : index
    %c0_6 = arith.constant 0 : index
    %6 = vector.load %arg2[%c32, %c0_6] : memref<160x128xbf16, #tpu.memory_space<vmem>>, vector<32x128xbf16>
    %cst_7 = arith.constant dense<0.000000e+00> : vector<96x128xf32>
    %7 = tpu.matmul %5, %6, %cst_7 {dimension_numbers = #tpu.dot_dimension_numbers<[1], [0], [0], [1], [0, 0, 1, 1], [], []>} : vector<96x32xbf16>, vector<32x128xbf16>, vector<96x128xf32> -> vector<96x128xf32>
    %8 = arith.addf %3, %7 : vector<96x128xf32>
    %c2 = arith.constant 2 : index
    %c0_8 = arith.constant 0 : index
    %c0_9 = arith.constant 0 : index
    %9 = vector.load %arg1[%c2, %c0_8, %c0_9] : memref<10x16x32xbf16, #tpu.memory_space<vmem>>, vector<6x16x32xbf16>
    %10 = vector.shape_cast %9 : vector<6x16x32xbf16> to vector<96x32xbf16>
    %c64 = arith.constant 64 : index
    %c0_10 = arith.constant 0 : index
    %11 = vector.load %arg2[%c64, %c0_10] : memref<160x128xbf16, #tpu.memory_space<vmem>>, vector<32x128xbf16>
    %cst_11 = arith.constant dense<0.000000e+00> : vector<96x128xf32>
    %12 = tpu.matmul %10, %11, %cst_11 {dimension_numbers = #tpu.dot_dimension_numbers<[1], [0], [0], [1], [0, 0, 1, 1], [], []>} : vector<96x32xbf16>, vector<32x128xbf16>, vector<96x128xf32> -> vector<96x128xf32>
    %13 = arith.addf %8, %12 : vector<96x128xf32>
    %c3 = arith.constant 3 : index
    %c0_12 = arith.constant 0 : index
    %c0_13 = arith.constant 0 : index
    %14 = vector.load %arg1[%c3, %c0_12, %c0_13] : memref<10x16x32xbf16, #tpu.memory_space<vmem>>, vector<6x16x32xbf16>
    %15 = vector.shape_cast %14 : vector<6x16x32xbf16> to vector<96x32xbf16>
    %c96 = arith.constant 96 : index
    %c0_14 = arith.constant 0 : index
    %16 = vector.load %arg2[%c96, %c0_14] : memref<160x128xbf16, #tpu.memory_space<vmem>>, vector<32x128xbf16>
    %cst_15 = arith.constant dense<0.000000e+00> : vector<96x128xf32>
    %17 = tpu.matmul %15, %16, %cst_15 {dimension_numbers = #tpu.dot_dimension_numbers<[1], [0], [0], [1], [0, 0, 1, 1], [], []>} : vector<96x32xbf16>, vector<32x128xbf16>, vector<96x128xf32> -> vector<96x128xf32>
    %18 = arith.addf %13, %17 : vector<96x128xf32>
    %c4 = arith.constant 4 : index
    %c0_16 = arith.constant 0 : index
    %c0_17 = arith.constant 0 : index
    %19 = vector.load %arg1[%c4, %c0_16, %c0_17] : memref<10x16x32xbf16, #tpu.memory_space<vmem>>, vector<6x16x32xbf16>
    %20 = vector.shape_cast %19 : vector<6x16x32xbf16> to vector<96x32xbf16>
    %c128 = arith.constant 128 : index
    %c0_18 = arith.constant 0 : index
    %21 = vector.load %arg2[%c128, %c0_18] : memref<160x128xbf16, #tpu.memory_space<vmem>>, vector<32x128xbf16>
    %cst_19 = arith.constant dense<0.000000e+00> : vector<96x128xf32>
    %22 = tpu.matmul %20, %21, %cst_19 {dimension_numbers = #tpu.dot_dimension_numbers<[1], [0], [0], [1], [0, 0, 1, 1], [], []>} : vector<96x32xbf16>, vector<32x128xbf16>, vector<96x128xf32> -> vector<96x128xf32>
    %23 = arith.addf %18, %22 : vector<96x128xf32>
    %c0_20 = arith.constant 0 : index
    %c0_21 = arith.constant 0 : index
    %24 = vector.load %arg3[%c0_20, %c0_21] : memref<1x128xf32, #tpu.memory_space<vmem>>, vector<1x128xf32>
    %25 = vector.broadcast %24 : vector<1x128xf32> to vector<96x128xf32>
    %26 = arith.addf %23, %25 : vector<96x128xf32>
    %cst_22 = arith.constant 0.000000e+00 : f32
    %27 = vector.broadcast %cst_22 : f32 to vector<96x128xf32>
    %28 = arith.maximumf %26, %27 : vector<96x128xf32>
    %29 = vector.shape_cast %28 : vector<96x128xf32> to vector<6x16x128xf32>
    %c0_23 = arith.constant 0 : index
    %c0_24 = arith.constant 0 : index
    %30 = vector.load %arg4[%c0_23, %c0_24] : memref<6x128xf32, #tpu.memory_space<vmem>>, vector<6x128xf32>
    %31 = vector.shape_cast %30 : vector<6x128xf32> to vector<6x1x128xf32>
    %32 = vector.broadcast %31 : vector<6x1x128xf32> to vector<6x16x128xf32>
    %33 = arith.mulf %29, %32 : vector<6x16x128xf32>
    %cst_25 = arith.constant dense<0xFF800000> : vector<16x128xf32>
    %34 = vector.multi_reduction <maximumf>, %33, %cst_25 [0] : vector<6x16x128xf32> to vector<16x128xf32>
    %35 = arith.truncf %34 : vector<16x128xf32> to vector<16x128xbf16>
    %c0_26 = arith.constant 0 : index
    %c0_27 = arith.constant 0 : index
    %36 = vector.load %arg5[%c0_26, %c0_27] : memref<128x128xbf16, #tpu.memory_space<vmem>>, vector<128x128xbf16>
    %cst_28 = arith.constant dense<0.000000e+00> : vector<16x128xf32>
    %37 = tpu.matmul %35, %36, %cst_28 {dimension_numbers = #tpu.dot_dimension_numbers<[1], [0], [0], [1], [0, 0, 1, 1], [], []>} : vector<16x128xbf16>, vector<128x128xbf16>, vector<16x128xf32> -> vector<16x128xf32>
    %c0_29 = arith.constant 0 : index
    %c0_30 = arith.constant 0 : index
    %38 = vector.load %arg6[%c0_29, %c0_30] : memref<1x128xf32, #tpu.memory_space<vmem>>, vector<1x128xf32>
    %39 = vector.broadcast %38 : vector<1x128xf32> to vector<16x128xf32>
    %40 = arith.addf %37, %39 : vector<16x128xf32>
    %c0_31 = arith.constant 0 : index
    %c0_32 = arith.constant 0 : index
    %41 = vector.load %arg7[%c0_31, %c0_32] : memref<16x128xf32, #tpu.memory_space<vmem>>, vector<16x128xf32>
    tpu.vector_store %arg7[%c0_31, %c0_32], %40 {strides = array<i32>} : memref<16x128xf32, #tpu.memory_space<vmem>>, vector<16x128xf32>,
    return
  }
  func.func @transform_0(%arg0: i32) -> (i32, i32, i32) {
    %c0_i32 = arith.constant 0 : i32
    %c0_i32_0 = arith.constant 0 : i32
    %c0_i32_1 = arith.constant 0 : i32
    return %c0_i32, %arg0, %c0_i32_0 : i32, i32, i32
  }
  func.func @transform_1(%arg0: i32) -> (i32, i32) {
    %c0_i32 = arith.constant 0 : i32
    %c0_i32_0 = arith.constant 0 : i32
    %c0_i32_1 = arith.constant 0 : i32
    return %c0_i32, %c0_i32_0 : i32, i32
  }
  func.func @transform_2(%arg0: i32) -> (i32, i32) {
    %c0_i32 = arith.constant 0 : i32
    %c0_i32_0 = arith.constant 0 : i32
    %c0_i32_1 = arith.constant 0 : i32
    return %c0_i32, %c0_i32_0 : i32, i32
  }
  func.func @transform_3(%arg0: i32) -> (i32, i32) {
    %c0_i32 = arith.constant 0 : i32
    %c0_i32_0 = arith.constant 0 : i32
    %c0_i32_1 = arith.constant 0 : i32
    return %c0_i32, %c0_i32_0 : i32, i32
  }
  func.func @transform_4(%arg0: i32) -> (i32, i32) {
    %c0_i32 = arith.constant 0 : i32
    %c0_i32_0 = arith.constant 0 : i32
    %c0_i32_1 = arith.constant 0 : i32
    return %c0_i32, %c0_i32_0 : i32, i32
  }
  func.func @transform_5(%arg0: i32) -> (i32, i32) {
    %c0_i32 = arith.constant 0 : i32
    %c0_i32_0 = arith.constant 0 : i32
    %c0_i32_1 = arith.constant 0 : i32
    return %c0_i32, %c0_i32_0 : i32, i32
  }
  func.func @transform_6(%arg0: i32) -> (i32, i32) {
    %c0_i32 = arith.constant 0 : i32
    %c0_i32_0 = arith.constant 0 : i32
    return %arg0, %c0_i32 : i32, i32
  }
}

</mosaic_0001>

<bundles_post_ra>
// kernel: discriminator_forward.1
= control target key start
LH: loop header
LB: loop body
LE: loop exit
PB: predicated region body
PF: predicated region fallthrough
CT: control target
= control target key end

     0   :  { %vm99_vm0 = vcmask 261120   ;;  %v1478_v41 = vmov 0.0   ;;  %vm1479_vm1 = vmmov 0   ;;  %v1480_v55 = vmov 1966171168   ;;  %s1739_s1 = inlined_call_operand.vmem [shape: bf16[160,128], index: 1, kind: input, shape index: {}]   ;;  %s1740_s0 = inlined_call_operand.vmem [shape: bf16[10,16,32], index: 0, kind: input, shape index: {}]   ;;  %s1741_s4 = inlined_call_operand.vmem [shape: bf16[128,128], index: 4, kind: input, shape index: {}]   ;;  %s1742_s3 = inlined_call_operand.vmem [shape: f32[6,128], index: 3, kind: input, shape index: {}]   ;;  %s1743_s2 = inlined_call_operand.vmem [shape: f32[1,128], index: 2, kind: input, shape index: {}]   ;;  %s1744_s5 = inlined_call_operand.vmem [shape: f32[1,128], index: 5, kind: input, shape index: {}]   ;;  %s1745_s6 = inlined_call_operand.vmem [shape: f32[16,128], index: 6, kind: output, shape index: {}]  }
   0x1   :  { %v1429_v0 = vld [vmem:[%s1739_s1 + $0x10] sm:$0xff]   ;;  %v1430_v1 = vld [vmem:[%s1739_s1 + $0x20] sm:$0xff]   ;;  %v1431_v2 = vld [vmem:[%s1739_s1 + $0x18] sm:$0xff]   ;;  %v885_v56 = vunpack.c.l.s4 %v1480_v55  ;;  %v887_v57 = vlaneseq }
   0x2   :  { %1278 = vmatprep.subr.bf16.mxu1 %v1429_v0  ;;  %1310 = vmatprep.subr.bf16.mxu0 %v1430_v1  ;;  %v1432_v3 = vld [vmem:[%s1739_s1 + $0x28] sm:$0xff]   ;;  %v1434_v5 = vld [vmem:[%s1740_s0 + $0x10] sm:$0xff]   ;;  %v1436_v7 = vld [vmem:[%s1740_s0 + $0x18] sm:$0xff]  }
   0x3   :  { %1279 = vmatpush3.bf16.msra.mxu1 %v1429_v0  ;;  %1311 = vmatpush3.bf16.msra.mxu0 %v1430_v1  ;;  %v1433_v4 = vld [vmem:[%s1740_s0 + $0x8] sm:$0xff]   ;;  %v1435_v6 = vld [vmem:[%s1740_s0 + $0x10] sm:$0xff]   ;;  %v1438_v9 = vld [vmem:[%s1740_s0 + $0x18] sm:$0xff]   ;;  %v886_v60 = vunpack.c.0.s8 %v885_v56  ;;  %v888_v61 = vshrl.u32 %v887_v57, 7 }
   0x4   :  { %1280 = vmatprep.subr.bf16.mxu1 %v1431_v2  ;;  %1312 = vmatprep.subr.bf16.mxu0 %v1432_v3  ;;  %v1437_v8 = vld [vmem:[%s1739_s1 + $0x30] sm:$0xff]   ;;  %v1439_v10 = vld [vmem:[%s1740_s0 + $0x20] sm:$0xff]   ;;  %v1442_v12 = vld [vmem:[%s1739_s1 + $0x38] sm:$0xff]  }
   0x5   :  { %1282 = vmatprep.mubr.msk.bf16.mxu1 %vm99_vm0, %v1433_v4  ;;  %1314 = vmatprep.mubr.msk.bf16.mxu0 %vm99_vm0, %v1434_v5  ;;  %v1440_v11 = vld [vmem:[%s1740_s0 + $0x20] sm:$0xff]   ;;  %v1441_v13 = vld [vmem:[%s1740_s0 + $0x28] sm:$0xff]   ;;  %v1444_v15 = vld [vmem:[%s1740_s0 + $0x30] sm:$0xff]   ;;  %v1694_v0 = vsub.s32 %v886_v60, %v888_v61 }
   0x6   :  { %v1443_v14 = vld [vmem:[%s1740_s0 + $0x28] sm:$0xff]   ;;  %v1446_v16 = vld [vmem:[%s1739_s1] sm:$0xff]   ;;  %v1445_v18 = vld [vmem:[%s1740_s0 + $0x30] sm:$0xff]  }
   0x7   :  { %1281 = vmatpush3.bf16.msra.mxu1 %v1431_v2  ;;  %1313 = vmatpush3.bf16.msra.mxu0 %v1432_v3  ;;  %v1448_v17 = vld [vmem:[%s1739_s1 + $0x8] sm:$0xff]   ;;  %v1447_v19 = vld [vmem:[%s1740_s0 + $0x38] sm:$0xff]   ;;  %v1449_v20 = vld [vmem:[%s1740_s0] sm:$0xff]  }
   0x8   :  { %1326 = vmatprep.subr.bf16.mxu0 %v1437_v8  ;;  %1294 = vmatprep.subr.bf16.mxu1 %v1446_v16  ;;  %v1450_v21 = vld [vmem:[%s1740_s0 + $0x18] sm:$0xff]   ;;  %v1453_v22 = vld [vmem:[%s1739_s1 + $0x40] sm:$0xff]   ;;  %v1451_v23 = vld [vmem:[%s1740_s0 + $0x8] sm:$0xff]  }
   0x9   :  { %v1452_v24 = vld [vmem:[%s1740_s0 + $0x20] sm:$0xff]   ;;  %v1454_v25 = vld [vmem:[%s1740_s0 + $0x10] sm:$0xff]   ;;  %v1455_v26 = vld [vmem:[%s1740_s0 + $0x28] sm:$0xff]  }
   0xa   :  { %1283 = vmatmul.mubr.msk.bf16.vlgmr.msra.gmra.mrb[0].mxu1 %vm99_vm0, %v1435_v6  ;;  %1315 = vmatmul.mubr.msk.bf16.vlgmr.msra.gmra.mrb[0].mxu0 %vm99_vm0, %v1436_v7  ;;  %v1458_v27 = vld [vmem:[%s1739_s1 + $0x48] sm:$0xff]   ;;  %v1456_v28 = vld [vmem:[%s1740_s0 + $0x18] sm:$0xff]   ;;  %v1457_v29 = vld [vmem:[%s1740_s0 + $0x30] sm:$0xff]  }
   0xb   :  { %1286 = vmatprep.mubr.msk.bf16.mxu1 %vm99_vm0, %v1438_v9  ;;  %1327 = vmatpush3.bf16.msra.mxu0 %v1437_v8  ;;  %v1459_v30 = vld [vmem:[%s1740_s0 + $0x20] sm:$0xff]   ;;  %v1460_v31 = vld [vmem:[%s1740_s0 + $0x38] sm:$0xff]   ;;  %v1461_v32 = vld [vmem:[%s1740_s0 + $0x28] sm:$0xff]  }
   0xc   :  { %1318 = vmatprep.mubr.msk.bf16.mxu0 %vm99_vm0, %v1439_v10  ;;  %1328 = vmatprep.subr.bf16.mxu0 %v1442_v12  ;;  %v1462_v33 = vld [vmem:[%s1740_s0 + $0x40] sm:$0xff]   ;;  %v1464_v35 = vld [vmem:[%s1740_s0 + $0x28] sm:$0xff]   ;;  %v1465_v36 = vld [vmem:[%s1740_s0 + $0x30] sm:$0xff]  }
   0xd   :  { %1295 = vmatpush3.bf16.msra.mxu1 %v1446_v16  ;;  %v1463_v34 = vld [vmem:[%s1740_s0 + $0x20] sm:$0xff]   ;;  %v1466_v37 = vld [vmem:[%s1740_s0 + $0x38] sm:$0xff]   ;;  %v1468_v39 = vld [vmem:[%s1740_s0 + $0x48] sm:$0xff]  }
   0xe   :  { %1296 = vmatprep.subr.bf16.mxu1 %v1448_v17  ;;  %v1467_v38 = vld [vmem:[%s1740_s0 + $0x40] sm:$0xff]   ;;  %v1470_v42 = vld [vmem:[%s1741_s4 + $0x8] sm:$0xff]   ;;  %v1471_v43 = vld [vmem:[%s1741_s4 + $0x10] sm:$0xff]  }
   0xf   :  { %1329 = vmatpush3.bf16.msra.mxu0 %v1442_v12  ;;  %v1469_v40 = vld [vmem:[%s1741_s4] sm:$0xff]   ;;  %v1472_v44 = vld [vmem:[%s1741_s4 + $0x18] sm:$0xff]   ;;  %v1475_v46 = vld [vmem:[%s1741_s4 + $0x28] sm:$0xff]  }
  0x10   :  { %1342 = vmatprep.subr.bf16.mxu0 %v1453_v22  ;;  %v1474_v45 = vld [vmem:[%s1741_s4 + $0x20] sm:$0xff]   ;;  %v1476_v47 = vld [vmem:[%s1741_s4 + $0x30] sm:$0xff]   ;;  %v1477_v48 = vld [vmem:[%s1741_s4 + $0x38] sm:$0xff]  }
  0x11   :  { %1297 = vmatpush3.bf16.msra.mxu1 %v1448_v17  ;;  %v881_v2 = vld [vmem:[%s1742_s3] sm:$0x3f]  ;;  %v932_v17 = vsub.s32 0, %v888_v61 }
  0x12   :  { %1287 = vmatmul.mubr.msk.bf16.gmra.mrb[4].mxu1 %vm99_vm0, %v1440_v11  ;;  %1319 = vmatmul.mubr.msk.bf16.gmra.mrb[4].mxu0 %vm99_vm0, %v1441_v13  ;;  %v890_v4 = vrot.slane %v881_v2, %v1694_v0  ;;  %v883_v13 = vcombine.high %v881_v2, %v881_v2 }
  0x13   :  { %1290 = vmatprep.mubr.msk.bf16.mxu1 %vm99_vm0, %v1443_v14  ;;  %1322 = vmatprep.mubr.msk.bf16.mxu0 %vm99_vm0, %v1444_v15  ;;  %v1707_v14 = vld [vmem:[%s1743_s2] ss:$0 sm:$0xff] }
  0x14   :  { %1358 = vmatprep.subr.bf16.mxu1 %v1478_v41  ;;  %v898_v6 = vcombine.high %v890_v4, %v890_v4 }
  0x16   :  { %v920_v15 = vrot.slane %v898_v6, %v1694_v0 }
  0x1a   :  { %1291 = vmatmul.mubr.msk.bf16.gmra.mrb[8].mxu1 %vm99_vm0, %v1445_v18  ;;  %1323 = vmatmul.mubr.msk.bf16.gmra.mrb[8].mxu0 %vm99_vm0, %v1447_v19  ;;  %v906_v18 = vrot.slane %v890_v4, %v1694_v0  ;;  %v929_v19 = vcombine.high %v920_v15, %v920_v15 }
  0x1b   :  { %1298 = vmatprep.mubr.msk.bf16.mxu1 %vm99_vm0, %v1449_v20  ;;  %1330 = vmatprep.mubr.msk.bf16.mxu0 %vm99_vm0, %v1450_v21  ;;  %v897_v21 = vrot.slane %v883_v13, %v1694_v0 }
  0x1d   :  { %v913_v57 = vrot.slane %v897_v21, %v1694_v0 }
  0x22   :  { %1299 = vmatmul.mubr.msk.bf16.vlgmr.msra.gmra.mrb[0].mxu1 %vm99_vm0, %v1451_v23  ;;  %1331 = vmatmul.mubr.msk.bf16.vlgmr.msra.gmra.mrb[0].mxu0 %vm99_vm0, %v1452_v24  ;;  %v928_v24 = vcombine.high %v906_v18, %v906_v18 }
  0x23   :  { %1302 = vmatprep.mubr.msk.bf16.mxu1 %vm99_vm0, %v1454_v25  ;;  %1343 = vmatpush3.bf16.msra.mxu0 %v1453_v22  ;;  %v937_v25 = vrot.slane %v920_v15, %v932_v17 }
  0x24   :  { %1334 = vmatprep.mubr.msk.bf16.mxu0 %vm99_vm0, %v1455_v26  ;;  %1344 = vmatprep.subr.bf16.mxu0 %v1458_v27 }
  0x25   :  { %1359 = vmatpush3.bf16.msra.mxu1 %v1469_v40 }
  0x26   :  { %1360 = vmatprep.subr.bf16.mxu1 %v1478_v41 }
  0x27   :  { %1345 = vmatpush3.bf16.msra.mxu0 %v1458_v27 }
  0x29   :  { %1361 = vmatpush3.bf16.msra.mxu1 %v1470_v42 }
  0x2a   :  { %1303 = vmatmul.mubr.msk.bf16.gmra.mrb[4].mxu1 %vm99_vm0, %v1456_v28  ;;  %1335 = vmatmul.mubr.msk.bf16.gmra.mrb[4].mxu0 %vm99_vm0, %v1457_v29  ;;  %v933_v29 = vrot.slane %v906_v18, %v932_v17 }
  0x2b   :  { %1306 = vmatprep.mubr.msk.bf16.mxu1 %vm99_vm0, %v1459_v30  ;;  %1338 = vmatprep.mubr.msk.bf16.mxu0 %vm99_vm0, %v1460_v31  ;;  %v945_v31 = vrot.slane %v929_v19, %v932_v17 }
  0x2c   :  { %1362 = vmatprep.subr.bf16.mxu1 %v1478_v41 }
  0x2d   :  { %1363 = vmatpush3.bf16.msra.mxu1 %v1471_v43 }
  0x2e   :  { %1364 = vmatprep.subr.bf16.mxu1 %v1478_v41 }
  0x31   :  { %1365 = vmatpush3.bf16.msra.mxu1 %v1472_v44 }
  0x32   :  { %1307 = vmatmul.mubr.msk.bf16.gmra.mrb[8].mxu1 %vm99_vm0, %v1461_v32  ;;  %1339 = vmatmul.mubr.msk.bf16.gmra.mrb[8].mxu0 %vm99_vm0, %v1462_v33 }
  0x33   :  { %1346 = vmatprep.mubr.msk.bf16.mxu0 %vm99_vm0, %v1463_v34  ;;  %1366 = vmatprep.subr.bf16.mxu1 %v1478_v41 }
  0x34   :  { %1374 = vmatprep.mubr.msk.bf16.mxu1 %vm1479_vm1, %v1478_v41 }
  0x35   :  { %1367 = vmatpush3.bf16.msra.mxu1 %v1474_v45 }
  0x36   :  { %1368 = vmatprep.subr.bf16.mxu1 %v1478_v41 }
  0x39   :  { %1369 = vmatpush3.bf16.msra.mxu1 %v1475_v46 }
  0x3a   :  { %1347 = vmatmul.mubr.msk.bf16.vlgmr.msra.gmra.mrb[0].mxu0 %vm99_vm0, %v1464_v35  ;;  %1370 = vmatprep.subr.bf16.mxu1 %v1478_v41 }
  0x3b   :  { %1350 = vmatprep.mubr.msk.bf16.mxu0 %vm99_vm0, %v1465_v36 }
  0x3d   :  { %1371 = vmatpush3.bf16.msra.mxu1 %v1476_v47 }
  0x3e   :  { %1372 = vmatprep.subr.bf16.mxu1 %v1478_v41  ;;  %v941_v41 = vrot.slane %v928_v24, %v932_v17 }
  0x41   :  { %1373 = vmatpush3.bf16.msra.mxu1 %v1477_v48 }
  0x42   :  { %1351 = vmatmul.mubr.msk.bf16.gmra.mrb[4].mxu0 %vm99_vm0, %v1466_v37 }
  0x43   :  { %1354 = vmatprep.mubr.msk.bf16.mxu0 %vm99_vm0, %v1467_v38  ;;  %v899_v38 = vcombine.high %v897_v21, %v897_v21 }
  0x4a   :  { %1355 = vmatmul.mubr.msk.bf16.gmra.mrb[8].mxu0 %vm99_vm0, %v1468_v39 }
  0xf5   :  { %v1300_v49 = vpop.f32.mrb[0].mxu1 }
  0xf6   :  { %v293_v50 = vpop.f32.mrb[1].mxu1 }
  0xf7   :  { %v1301_v51 = vpop.f32.mrb[2].mxu1 }
  0xf8   :  { %v296_v52 = vpop.f32.mrb[3].mxu1 }
  0xfd   :  { %v1304_v53 = vpop.f32.mrb[4].mxu1 }
  0xfe   :  { %v309_v54 = vpop.f32.mrb[5].mxu1 }
  0xff   :  { %v1305_v58 = vpop.f32.mrb[6].mxu1 }
 0x100   :  { %v312_v59 = vpop.f32.mrb[7].mxu1 }
 0x105   :  { %v1690_v62 = vpop.f32.mrb[8].mxu1 }
 0x106   :  { %v1692_v63 = vpop.f32.mrb[9].mxu1 }
 0x107   :  { %v1696_v1 = vpop.f32.mrb[10].mxu1 }
 0x108   :  { %v1701_v3 = vpop.f32.mrb[11].mxu1 }
 0x10d   :  { %v1348_v5 = vpop.f32.mrb[0].mxu0 }
 0x10e   :  { %v1378_v7 = vadd.f32 %v1348_v5, %v1300_v49  ;;  %v791_v8 = vpop.f32.mrb[1].mxu0 }
 0x10f   :  { %v1379_v9 = vadd.f32 %v791_v8, %v293_v50  ;;  %v1349_v10 = vpop.f32.mrb[2].mxu0 }
 0x110   :  { %v1380_v11 = vadd.f32 %v1349_v10, %v1301_v51  ;;  %v794_v12 = vpop.f32.mrb[3].mxu0  ;;  %v859_v20 = vadd.f32 %v1378_v7, %v1707_v14 }
 0x111   :  { %v1381_v16 = vadd.f32 %v794_v12, %v296_v52  ;;  %v857_v22 = vadd.f32 %v1379_v9, %v1707_v14  ;;  %v927_v52 = vrot.slane %v899_v38, %v1694_v0 }
 0x112   :  { %v860_v26 = vadd.f32 %v1380_v11, %v1707_v14  ;;  %v871_v34 = vmax.f32 %v859_v20, 0.0 }
 0x113   :  { %v858_v30 = vadd.f32 %v1381_v16, %v1707_v14  ;;  %v869_v39 = vmax.f32 %v857_v22, 0.0  ;;  %v953_v11 = vrot.slane %v927_v52, %v932_v17  ;;  %v949_v16 = vrot.slane %v913_v57, %v932_v17 }
 0x114   :  { %v872_v43 = vmax.f32 %v860_v26, 0.0  ;;  %v962_v49 = vmul.f32 %v937_v25, %v871_v34 }
 0x115   :  { %v1352_v23 = vpop.f32.mrb[4].mxu0  ;;  %v870_v46 = vmax.f32 %v858_v30, 0.0 }
 0x116   :  { %v1382_v27 = vadd.f32 %v1352_v23, %v1304_v53  ;;  %v807_v28 = vpop.f32.mrb[5].mxu0  ;;  %v960_v53 = vmul.f32 %v933_v29, %v869_v39 }
 0x117   :  { %v1383_v32 = vadd.f32 %v807_v28, %v309_v54  ;;  %v1353_v33 = vpop.f32.mrb[6].mxu0  ;;  %v961_v4 = vmul.f32 %v933_v29, %v870_v46 }
 0x118   :  { %v863_v35 = vadd.f32 %v1382_v27, %v1707_v14  ;;  %v1384_v36 = vadd.f32 %v1353_v33, %v1305_v58  ;;  %v810_v37 = vpop.f32.mrb[7].mxu0  ;;  %v963_v58 = vmul.f32 %v937_v25, %v872_v43 }
 0x119   :  { %v861_v40 = vadd.f32 %v1383_v32, %v1707_v14  ;;  %v1385_v42 = vadd.f32 %v810_v37, %v312_v59 }
 0x11a   :  { %v875_v44 = vmax.f32 %v863_v35, 0.0  ;;  %v864_v45 = vadd.f32 %v1384_v36, %v1707_v14 }
 0x11b   :  { %v873_v47 = vmax.f32 %v861_v40, 0.0  ;;  %v862_v48 = vadd.f32 %v1385_v42, %v1707_v14 }
 0x11c   :  { %v966_v50 = vmul.f32 %v945_v31, %v875_v44  ;;  %v876_v51 = vmax.f32 %v864_v45, 0.0 }
 0x11d   :  { %v964_v54 = vmul.f32 %v941_v41, %v873_v47  ;;  %v874_v55 = vmax.f32 %v862_v48, 0.0  ;;  %v1356_v56 = vpop.f32.mrb[8].mxu0 }
 0x11e   :  { %v973_v59 = vmax.f32 %v962_v49, %v966_v50  ;;  %v967_v60 = vmul.f32 %v945_v31, %v876_v51  ;;  %v1386_v61 = vadd.f32 %v1356_v56, %v1690_v62  ;;  %v823_v2 = vpop.f32.mrb[9].mxu0 }
 0x11f   :  { %v972_v5 = vmax.f32 %v960_v53, %v964_v54  ;;  %v965_v6 = vmul.f32 %v941_v41, %v874_v55  ;;  %v1387_v7 = vadd.f32 %v823_v2, %v1692_v63  ;;  %v1357_v8 = vpop.f32.mrb[10].mxu0 }
 0x120   :  { %v978_v9 = vmax.f32 %v963_v58, %v967_v60  ;;  %v867_v10 = vadd.f32 %v1386_v61, %v1707_v14  ;;  %v1388_v12 = vadd.f32 %v1357_v8, %v1696_v1  ;;  %v826_v13 = vpop.f32.mrb[11].mxu0 }
 0x121   :  { %v977_v0 = vmax.f32 %v961_v4, %v965_v6  ;;  %v865_v15 = vadd.f32 %v1387_v7, %v1707_v14  ;;  %v1389_v62 = vadd.f32 %v826_v13, %v1701_v3  ;;  %v1220_v3 = vld [vmem:[%s1744_s5] ss:$0 sm:$0xff] }
 0x122   :  { %v879_v18 = vmax.f32 %v867_v10, 0.0  ;;  %v868_v19 = vadd.f32 %v1388_v12, %v1707_v14 }
 0x123   :  { %v877_v20 = vmax.f32 %v865_v15, 0.0  ;;  %v866_v63 = vadd.f32 %v1389_v62, %v1707_v14 }
 0x124   :  { %v970_v21 = vmul.f32 %v953_v11, %v879_v18  ;;  %v880_v22 = vmax.f32 %v868_v19, 0.0 }
 0x125   :  { %v968_v23 = vmul.f32 %v949_v16, %v877_v20  ;;  %v878_v24 = vmax.f32 %v866_v63, 0.0 }
 0x126   :  { %v975_v25 = vmax.f32 %v973_v59, %v970_v21  ;;  %v971_v26 = vmul.f32 %v953_v11, %v880_v22 }
 0x127   :  { %v974_v1 = vmax.f32 %v972_v5, %v968_v23  ;;  %v969_v27 = vmul.f32 %v949_v16, %v878_v24 }
 0x128   :  { %v980_v28 = vmax.f32 %v978_v9, %v971_v26 }
 0x129   :  { %v976_v29 = vmax.f32 %v974_v1, %v975_v25  ;;  %v979_v30 = vmax.f32 %v977_v0, %v969_v27 }
 0x12b   :  { %v981_v17 = vmax.f32 %v979_v30, %v980_v28 }
 0x12d   :  { %v982_v31 = vpack.c.bf16 %v981_v17, %v976_v29 }
 0x12f   :  { %1375 = vmatmul.mubr.bf16.vlgmr.msra.gmra.mrb[12].mxu1 %v982_v31 }
 0x202   :  { %v1088_v32 = vpop.f32.mrb[12].mxu1 }
 0x203   :  { %v1089_v14 = vadd.f32 %v1220_v3, %v1088_v32  ;;  %v1376_v33 = vpop.f32.mrb[13].mxu1 }
 0x204   :  { %v1091_v34 = vpop.f32.mrb[14].mxu1 }
 0x205   :  { %1095 = vst [vmem:[%s1745_s6] sm:$0xff] %v1089_v14  ;;  %v1092_v35 = vadd.f32 %v1220_v3, %v1091_v34  ;;  %v1377_v36 = vpop.f32.mrb[15].mxu1 }
 0x207   :  { %1096 = vst [vmem:[%s1745_s6 + $0x8] sm:$0xff] %v1092_v35 }

</bundles_post_ra>
